<compile_context>
chip_gen: v7x
topology: tpu7x:2x2x1
jax: 0.10.0
libtpu: 0.0.40
codegen_flags: <defaults>
</compile_context>

<pallas_src>
import functools

import jax
import jax.numpy as jnp
from jax import lax
from jax.experimental import pallas as pl
from jax.experimental.pallas import tpu as pltpu


def _round_up(n, m):
    return ((n + m - 1) // m) * m


def _leaky_relu(x, negative_slope=0.2):
    # Single vmax per element instead of compare+select.
    return jnp.maximum(x, negative_slope * x)


def mlp_kernel(x_ref,
               w1_ref, b1_ref,
               w2_ref, b2_ref,
               w3_ref, b3_ref,
               w4_ref, b4_ref,
               o_ref,
               *, chunk_b, n_chunks):
    """Fused 4-layer MLP on one (nin, TILE_B) batch tile.

    Layout (feature-major, batch on lanes):
      x_ref : (nin,      TILE_B)  bf16
      wN    : (out,      in)      bf16   (PyTorch nn.Linear weight layout)
      bN    : (out,      1)       f32
      o_ref : (nout_pad, TILE_B)  f32 (or bf16)

    The tile is processed in `chunk_b`-wide lane chunks (n_chunks of them) so
    the per-chunk live set stays inside the 64-vreg register file.
    """

    def compute_chunk(col):
        h = x_ref[:, pl.ds(col, chunk_b)]          # bf16 -> feeds MXU directly

        h = jnp.dot(w1_ref[...], h,
                    preferred_element_type=jnp.float32) + b1_ref[...]
        h = _leaky_relu(h)

        h = jnp.dot(w2_ref[...], h.astype(jnp.bfloat16),
                    preferred_element_type=jnp.float32) + b2_ref[...]
        h = _leaky_relu(h)

        h = jnp.dot(w3_ref[...], h.astype(jnp.bfloat16),
                    preferred_element_type=jnp.float32) + b3_ref[...]
        h = _leaky_relu(h)

        out = jnp.dot(w4_ref[...], h.astype(jnp.bfloat16),
                      preferred_element_type=jnp.float32) + b4_ref[...]
        o_ref[:, pl.ds(col, chunk_b)] = out.astype(o_ref.dtype)

    if n_chunks == 1:
        compute_chunk(0)
    else:
        def body(c, carry):
            col = pl.multiple_of(c * chunk_b, chunk_b)
            compute_chunk(col)
            return carry

        lax.fori_loop(0, n_chunks, body, 0)


def _choose_tiles(B, requested_tile_b):
    """Pick (tile_b, chunk_b): tile_b a multiple of 128, capped so the grid
    has >= 2 steps when the batch allows it (megacore on v7x); chunk_b the
    largest of {512, 256, 128} dividing tile_b."""
    B128 = _round_up(B, 128)
    tb = _round_up(max(128, min(int(requested_tile_b), B128)), 128)
    if B128 >= 256:                      # leave work for a 2nd TensorCore
        half = max(128, _round_up(pl.cdiv(B, 2), 128))
        tb = min(tb, half)
    for c in (512, 256, 128):
        if tb % c == 0:
            return tb, c
    return tb, 128


def mlp_forward_feature_major(xT, wb_args, nout_pad, tile_b, chunk_b, out_dtype):
    """xT: (nin, B) bf16, batch on lanes.  Returns (nout_pad, B) out_dtype.

    NOTE: the ragged tail tile reads out-of-bounds (unspecified) columns of
    xT; those output columns are never written back.  Safe because every
    output column depends only on its own input column.
    """
    nin, B = xT.shape
    grid_b = pl.cdiv(B, tile_b)
    n_chunks = tile_b // chunk_b

    kernel = functools.partial(mlp_kernel, chunk_b=chunk_b, n_chunks=n_chunks)

    # x / out: tiled along the (lane) batch axis.  Weights & biases: whole-
    # array blocks with a constant index_map -> fetched once, VMEM-resident.
    # (a.shape is evaluated eagerly; the lambdas capture nothing.)
    x_spec = pl.BlockSpec((nin, tile_b), lambda i: (0, i))
    wb_specs = [pl.BlockSpec(a.shape, lambda i: (0, 0)) for a in wb_args]
    out_spec = pl.BlockSpec((nout_pad, tile_b), lambda i: (0, i))

    return pl.pallas_call(
        kernel,
        out_shape=jax.ShapeDtypeStruct((nout_pad, B), out_dtype),
        grid=(grid_b,),
        in_specs=[x_spec] + wb_specs,
        out_specs=out_spec,
        compiler_params=pltpu.CompilerParams(
            # Batch tiles are independent -> megacore split on v7x.
            dimension_semantics=("parallel",),
        ),
    )(xT, *wb_args)


@functools.partial(jax.jit, static_argnames=("tile_b", "out_dtype"))
def mlp_forward(x, params, tile_b=4096, out_dtype=jnp.float32):
    """x: (B, nin) float32. params: w1..w4 as (out, in), b1..b4 as (out, 1).

    Returns (B, nout) in `out_dtype`, matching MLP.forward semantics.
    """
    B, nin = x.shape
    nout = params["w4"].shape[0]
    nout_pad = _round_up(nout, 8)          # unmasked 8-sublane writeback

    tb, cb = _choose_tiles(B, tile_b)

    # Batch-on-lanes layout + bf16 MXU feed (halves x DMA bytes).
    # TODO(synk): callers that already hold (nin, B) activations should use
    # mlp_forward_feature_major directly and skip this transpose pass.
    xT = x.T.astype(jnp.bfloat16)

    w4, b4 = params["w4"], params["b4"]
    if nout_pad != nout:
        w4 = jnp.pad(w4, ((0, nout_pad - nout), (0, 0)))
        b4 = jnp.pad(b4, ((0, nout_pad - nout), (0, 0)))

    wb_args = (
        params["w1"].astype(jnp.bfloat16), params["b1"].astype(jnp.float32),
        params["w2"].astype(jnp.bfloat16), params["b2"].astype(jnp.float32),
        params["w3"].astype(jnp.bfloat16), params["b3"].astype(jnp.float32),
        w4.astype(jnp.bfloat16), b4.astype(jnp.float32),
    )

    outT = mlp_forward_feature_major(xT, wb_args, nout_pad, tb, cb, out_dtype)
    return outT[:nout, :].T


def init_mlp_params(key, nin, nout, nh):
    """Deterministic init mimicking PyTorch nn.Linear default
    (uniform(-1/sqrt(fan_in), 1/sqrt(fan_in))).  Weights stored as (out, in)."""
    dims = [(nh, nin), (nh, nh), (nh, nh), (nout, nh)]
    params = {}
    for i, (fout, fin) in enumerate(dims, start=1):
        key, kw, kb = jax.random.split(key, 3)
        bound = 1.0 / (float(fin) ** 0.5)
        params[f"w{i}"] = jax.random.uniform(
            kw, (fout, fin), jnp.float32, minval=-bound, maxval=bound)
        params[f"b{i}"] = jax.random.uniform(
            kb, (fout, 1), jnp.float32, minval=-bound, maxval=bound)
    return params


def mlp_reference_bf16(x, params):
    """Plain-JAX reference mirroring the kernel's bf16-in / f32-accumulate math."""
    h = x.T.astype(jnp.bfloat16)
    for i in range(1, 5):
        w = params[f"w{i}"].astype(jnp.bfloat16)
        h = jnp.dot(w, h, preferred_element_type=jnp.float32) + params[f"b{i}"]
        if i < 4:
            h = jnp.maximum(h, 0.2 * h).astype(jnp.bfloat16)
    return h.T


def mlp_reference_f32(x, params):
    """True f32 reference matching the PyTorch module's math."""
    h = x
    for i in range(1, 5):
        h = h @ params[f"w{i}"].T + params[f"b{i}"].T
        if i < 4:
            h = jnp.maximum(h, 0.2 * h)
    return h


if __name__ == "__main__":
    # Small shapes consistent with the module: nin -> nh -> nh -> nh -> nout
    nin, nout, nh = 4, 6, 32

    key = jax.random.PRNGKey(0)
    params = init_mlp_params(jax.random.PRNGKey(0), nin, nout, nh)

    # batch=8   : single 128-wide tile, single chunk.
    # batch=1000: 2 grid steps of 512 (megacore-friendly) + ragged tail.
    # batch=3000: 1536-wide tiles walked in 512-lane chunks + ragged tail.
    for batch in (8, 1000, 3000):
        key, kx = jax.random.split(key)
        x = jax.random.normal(kx, (batch, nin), jnp.float32)

        out = jax.block_until_ready(mlp_forward(x, params))
        assert out.shape == (batch, nout)

        ref_bf16 = mlp_reference_bf16(x, params)
        assert jnp.allclose(out, ref_bf16, atol=1e-4, rtol=1e-4), \
            f"mismatch vs bf16-mirrored reference at batch={batch}"

        ref_f32 = mlp_reference_f32(x, params)
        assert jnp.allclose(out, ref_f32, atol=5e-2, rtol=5e-2), \
            f"mismatch vs f32 reference at batch={batch}"

    print("KERNEL_OK")
</pallas_src>

<mosaic_0001>
module attributes {stable_mosaic.version = 11 : i64} {
  func.func @mlp_kernel(%arg0: i32, %arg1: memref<4x128xbf16, #tpu.memory_space<vmem>>, %arg2: memref<32x4xbf16, #tpu.memory_space<vmem>>, %arg3: memref<32x1xf32, #tpu.memory_space<vmem>>, %arg4: memref<32x32xbf16, #tpu.memory_space<vmem>>, %arg5: memref<32x1xf32, #tpu.memory_space<vmem>>, %arg6: memref<32x32xbf16, #tpu.memory_space<vmem>>, %arg7: memref<32x1xf32, #tpu.memory_space<vmem>>, %arg8: memref<8x32xbf16, #tpu.memory_space<vmem>>, %arg9: memref<8x1xf32, #tpu.memory_space<vmem>>, %arg10: memref<8x128xf32, #tpu.memory_space<vmem>>) attributes {dimension_semantics = [#tpu.dimension_semantics<parallel>], iteration_bounds = array<i64: 1>, scalar_prefetch = 0 : i64, scratch_operands = 0 : i64, tpu.core_type = #tpu.core_type<tc>, window_params = [{transform_indices = @transform_0, window_bounds = array<i64: 4, 128>}, {pipeline_mode = #tpu.pipeline_mode<synchronous>, transform_indices = @transform_1, window_bounds = array<i64: 32, 4>}, {pipeline_mode = #tpu.pipeline_mode<synchronous>, transform_indices = @transform_2, window_bounds = array<i64: 32, 1>}, {pipeline_mode = #tpu.pipeline_mode<synchronous>, transform_indices = @transform_3, window_bounds = array<i64: 32, 32>}, {pipeline_mode = #tpu.pipeline_mode<synchronous>, transform_indices = @transform_4, window_bounds = array<i64: 32, 1>}, {pipeline_mode = #tpu.pipeline_mode<synchronous>, transform_indices = @transform_5, window_bounds = array<i64: 32, 32>}, {pipeline_mode = #tpu.pipeline_mode<synchronous>, transform_indices = @transform_6, window_bounds = array<i64: 32, 1>}, {pipeline_mode = #tpu.pipeline_mode<synchronous>, transform_indices = @transform_7, window_bounds = array<i64: 8, 32>}, {pipeline_mode = #tpu.pipeline_mode<synchronous>, transform_indices = @transform_8, window_bounds = array<i64: 8, 1>}, {transform_indices = @transform_9, window_bounds = array<i64: 8, 128>}]} {
    %c0 = arith.constant 0 : index
    %c0_0 = arith.constant 0 : index
    %0 = vector.load %arg1[%c0, %c0_0] : memref<4x128xbf16, #tpu.memory_space<vmem>>, vector<4x128xbf16>
    %c0_1 = arith.constant 0 : index
    %c0_2 = arith.constant 0 : index
    %1 = vector.load %arg2[%c0_1, %c0_2] : memref<32x4xbf16, #tpu.memory_space<vmem>>, vector<32x4xbf16>
    %cst = arith.constant dense<0.000000e+00> : vector<32x128xf32>
    %2 = tpu.matmul %1, %0, %cst {dimension_numbers = #tpu.dot_dimension_numbers<[1], [0], [0], [1], [0, 0, 1, 1], [], []>} : vector<32x4xbf16>, vector<4x128xbf16>, vector<32x128xf32> -> vector<32x128xf32>
    %c0_3 = arith.constant 0 : index
    %c0_4 = arith.constant 0 : index
    %3 = vector.load %arg3[%c0_3, %c0_4] : memref<32x1xf32, #tpu.memory_space<vmem>>, vector<32x1xf32>
    %4 = vector.broadcast %3 : vector<32x1xf32> to vector<32x128xf32>
    %5 = arith.addf %2, %4 : vector<32x128xf32>
    %cst_5 = arith.constant 2.000000e-01 : f32
    %6 = vector.broadcast %cst_5 : f32 to vector<32x128xf32>
    %7 = arith.mulf %6, %5 : vector<32x128xf32>
    %8 = arith.maximumf %5, %7 : vector<32x128xf32>
    %c0_6 = arith.constant 0 : index
    %c0_7 = arith.constant 0 : index
    %9 = vector.load %arg4[%c0_6, %c0_7] : memref<32x32xbf16, #tpu.memory_space<vmem>>, vector<32x32xbf16>
    %10 = arith.truncf %8 : vector<32x128xf32> to vector<32x128xbf16>
    %cst_8 = arith.constant dense<0.000000e+00> : vector<32x128xf32>
    %11 = tpu.matmul %9, %10, %cst_8 {dimension_numbers = #tpu.dot_dimension_numbers<[1], [0], [0], [1], [0, 0, 1, 1], [], []>} : vector<32x32xbf16>, vector<32x128xbf16>, vector<32x128xf32> -> vector<32x128xf32>
    %c0_9 = arith.constant 0 : index
    %c0_10 = arith.constant 0 : index
    %12 = vector.load %arg5[%c0_9, %c0_10] : memref<32x1xf32, #tpu.memory_space<vmem>>, vector<32x1xf32>
    %13 = vector.broadcast %12 : vector<32x1xf32> to vector<32x128xf32>
    %14 = arith.addf %11, %13 : vector<32x128xf32>
    %cst_11 = arith.constant 2.000000e-01 : f32
    %15 = vector.broadcast %cst_11 : f32 to vector<32x128xf32>
    %16 = arith.mulf %15, %14 : vector<32x128xf32>
    %17 = arith.maximumf %14, %16 : vector<32x128xf32>
    %c0_12 = arith.constant 0 : index
    %c0_13 = arith.constant 0 : index
    %18 = vector.load %arg6[%c0_12, %c0_13] : memref<32x32xbf16, #tpu.memory_space<vmem>>, vector<32x32xbf16>
    %19 = arith.truncf %17 : vector<32x128xf32> to vector<32x128xbf16>
    %cst_14 = arith.constant dense<0.000000e+00> : vector<32x128xf32>
    %20 = tpu.matmul %18, %19, %cst_14 {dimension_numbers = #tpu.dot_dimension_numbers<[1], [0], [0], [1], [0, 0, 1, 1], [], []>} : vector<32x32xbf16>, vector<32x128xbf16>, vector<32x128xf32> -> vector<32x128xf32>
    %c0_15 = arith.constant 0 : index
    %c0_16 = arith.constant 0 : index
    %21 = vector.load %arg7[%c0_15, %c0_16] : memref<32x1xf32, #tpu.memory_space<vmem>>, vector<32x1xf32>
    %22 = vector.broadcast %21 : vector<32x1xf32> to vector<32x128xf32>
    %23 = arith.addf %20, %22 : vector<32x128xf32>
    %cst_17 = arith.constant 2.000000e-01 : f32
    %24 = vector.broadcast %cst_17 : f32 to vector<32x128xf32>
    %25 = arith.mulf %24, %23 : vector<32x128xf32>
    %26 = arith.maximumf %23, %25 : vector<32x128xf32>
    %c0_18 = arith.constant 0 : index
    %c0_19 = arith.constant 0 : index
    %27 = vector.load %arg8[%c0_18, %c0_19] : memref<8x32xbf16, #tpu.memory_space<vmem>>, vector<8x32xbf16>
    %28 = arith.truncf %26 : vector<32x128xf32> to vector<32x128xbf16>
    %cst_20 = arith.constant dense<0.000000e+00> : vector<8x128xf32>
    %29 = tpu.matmul %27, %28, %cst_20 {dimension_numbers = #tpu.dot_dimension_numbers<[1], [0], [0], [1], [0, 0, 1, 1], [], []>} : vector<8x32xbf16>, vector<32x128xbf16>, vector<8x128xf32> -> vector<8x128xf32>
    %c0_21 = arith.constant 0 : index
    %c0_22 = arith.constant 0 : index
    %30 = vector.load %arg9[%c0_21, %c0_22] : memref<8x1xf32, #tpu.memory_space<vmem>>, vector<8x1xf32>
    %31 = vector.broadcast %30 : vector<8x1xf32> to vector<8x128xf32>
    %32 = arith.addf %29, %31 : vector<8x128xf32>
    %c0_23 = arith.constant 0 : index
    %c0_24 = arith.constant 0 : index
    %33 = vector.load %arg10[%c0_23, %c0_24] : memref<8x128xf32, #tpu.memory_space<vmem>>, vector<8x128xf32>
    tpu.vector_store %arg10[%c0_23, %c0_24], %32 {strides = array<i32>} : memref<8x128xf32, #tpu.memory_space<vmem>>, vector<8x128xf32>,
    return
  }
  func.func @transform_0(%arg0: i32) -> (i32, i32) {
    %c0_i32 = arith.constant 0 : i32
    %c0_i32_0 = arith.constant 0 : i32
    return %c0_i32, %arg0 : i32, i32
  }
  func.func @transform_1(%arg0: i32) -> (i32, i32) {
    %c0_i32 = arith.constant 0 : i32
    %c0_i32_0 = arith.constant 0 : i32
    %c0_i32_1 = arith.constant 0 : i32
    return %c0_i32, %c0_i32_0 : i32, i32
  }
  func.func @transform_2(%arg0: i32) -> (i32, i32) {
    %c0_i32 = arith.constant 0 : i32
    %c0_i32_0 = arith.constant 0 : i32
    %c0_i32_1 = arith.constant 0 : i32
    return %c0_i32, %c0_i32_0 : i32, i32
  }
  func.func @transform_3(%arg0: i32) -> (i32, i32) {
    %c0_i32 = arith.constant 0 : i32
    %c0_i32_0 = arith.constant 0 : i32
    %c0_i32_1 = arith.constant 0 : i32
    return %c0_i32, %c0_i32_0 : i32, i32
  }
  func.func @transform_4(%arg0: i32) -> (i32, i32) {
    %c0_i32 = arith.constant 0 : i32
    %c0_i32_0 = arith.constant 0 : i32
    %c0_i32_1 = arith.constant 0 : i32
    return %c0_i32, %c0_i32_0 : i32, i32
  }
  func.func @transform_5(%arg0: i32) -> (i32, i32) {
    %c0_i32 = arith.constant 0 : i32
    %c0_i32_0 = arith.constant 0 : i32
    %c0_i32_1 = arith.constant 0 : i32
    return %c0_i32, %c0_i32_0 : i32, i32
  }
  func.func @transform_6(%arg0: i32) -> (i32, i32) {
    %c0_i32 = arith.constant 0 : i32
    %c0_i32_0 = arith.constant 0 : i32
    %c0_i32_1 = arith.constant 0 : i32
    return %c0_i32, %c0_i32_0 : i32, i32
  }
  func.func @transform_7(%arg0: i32) -> (i32, i32) {
    %c0_i32 = arith.constant 0 : i32
    %c0_i32_0 = arith.constant 0 : i32
    %c0_i32_1 = arith.constant 0 : i32
    return %c0_i32, %c0_i32_0 : i32, i32
  }
  func.func @transform_8(%arg0: i32) -> (i32, i32) {
    %c0_i32 = arith.constant 0 : i32
    %c0_i32_0 = arith.constant 0 : i32
    %c0_i32_1 = arith.constant 0 : i32
    return %c0_i32, %c0_i32_0 : i32, i32
  }
  func.func @transform_9(%arg0: i32) -> (i32, i32) {
    %c0_i32 = arith.constant 0 : i32
    %c0_i32_0 = arith.constant 0 : i32
    return %c0_i32, %arg0 : i32, i32
  }
}

</mosaic_0001>

<bundles_post_ra>
// kernel: mlp_forward.1
= control target key start
LH: loop header
LB: loop body
LE: loop exit
PB: predicated region body
PF: predicated region fallthrough
CT: control target
= control target key end

     0   :  { %vm79_vm0 = vcmask 1041408   ;;  %vm72_vm1 = vcmask 31744   ;;  %v473_v1 = vmov 0   ;;  %vm180_vm2 = vcmask 261120   ;;  %s599_s0 = inlined_call_operand.vmem [shape: bf16[4,8], index: 0, kind: input, shape index: {}]   ;;  %s600_s1 = inlined_call_operand.vmem [shape: bf16[32,4], index: 1, kind: input, shape index: {}]   ;;  %s601_s2 = inlined_call_operand.vmem [shape: f32[32,1], index: 2, kind: input, shape index: {}]   ;;  %s602_s4 = inlined_call_operand.vmem [shape: f32[32,1], index: 4, kind: input, shape index: {}]   ;;  %s603_s6 = inlined_call_operand.vmem [shape: f32[32,1], index: 6, kind: input, shape index: {}]   ;;  %s604_s8 = inlined_call_operand.vmem [shape: f32[8,1], index: 8, kind: input, shape index: {}]   ;;  %s605_s3 = inlined_call_operand.vmem [shape: bf16[32,32], index: 3, kind: input, shape index: {}]   ;;  %s606_s5 = inlined_call_operand.vmem [shape: bf16[32,32], index: 5, kind: input, shape index: {}]   ;;  %s607_s7 = inlined_call_operand.vmem [shape: bf16[8,32], index: 7, kind: input, shape index: {}]   ;;  %s608_s9 = inlined_call_operand.vmem [shape: f32[8,8], index: 9, kind: output, shape index: {}]  }
   0x1   :  { %v33_v0 = vld [vmem:[%s599_s0] sm:$0x3]  ;;  %465 = vset.pattern.permute.xlu0 %v473_v1  ;;  %466 = vset.pattern.permute.xlu1 %v473_v1  ;;  %v468_v4 = vld [vmem:[%s600_s1 + $0x8] sm:$0xff]   ;;  %v40_v6 = vld [vmem:[%s601_s2 + $0x10] sm:$0xff]  ;;  %vm475_vm3 = vmmov 0  }
   0x2   :  { %461 = vmatprep.subr.msk.bf16.mxu0 %vm79_vm0, %v33_v0  ;;  %v81_v2 = vsel %vm79_vm0, %v33_v0, 0  ;;  %v467_v3 = vld [vmem:[%s600_s1] sm:$0xff]   ;;  %v39_v7 = vld [vmem:[%s601_s2 + $0x8] sm:$0xff]  ;;  %54 = vperm.xlu1 %466, %v40_v6   ;;  %v41_v8 = vld [vmem:[%s601_s2 + $0x18] sm:$0xff] }
   0x3   :  { %432 = vmatpush3.bf16.msra.mxu0 %v81_v2  ;;  %v38_v5 = vld [vmem:[%s601_s2] sm:$0xff]  ;;  %433 = vmatprep.mubr.msk.bf16.mxu0 %vm72_vm1, %v467_v3  ;;  %v147_v10 = vld [vmem:[%s602_s4 + $0x8] sm:$0xff]  ;;  %v148_v11 = vld [vmem:[%s602_s4 + $0x10] sm:$0xff]  ;;  %v474_v2 = vmov 0.0  }
   0x4   :  { %44 = vperm.xlu0 %465, %v38_v5   ;;  %v146_v9 = vld [vmem:[%s602_s4] sm:$0xff]  ;;  %v149_v12 = vld [vmem:[%s602_s4 + $0x18] sm:$0xff]  ;;  %v251_v14 = vld [vmem:[%s603_s6 + $0x8] sm:$0xff] }
   0x5   :  { %v250_v13 = vld [vmem:[%s603_s6] sm:$0xff]  ;;  %v252_v15 = vld [vmem:[%s603_s6 + $0x10] sm:$0xff]  ;;  %v253_v16 = vld [vmem:[%s603_s6 + $0x18] sm:$0xff] }
   0x6   :  { %434 = vmatmul.mubr.msk.bf16.vlgmr.msra.gmra.mrb[0].mxu0 %vm72_vm1, %v468_v4  ;;  %59 = vperm.xlu1 %466, %v41_v8   ;;  %v350_v17 = vld [vmem:[%s604_s8] sm:$0xff]  ;;  %v470_v41 = vld [vmem:[%s605_s3 + $0x8] sm:$0xff]  }
   0x7   :  { %v469_v18 = vld [vmem:[%s605_s3] sm:$0xff]   ;;  %v472_v1 = vld [vmem:[%s606_s5 + $0x8] sm:$0xff]  }
   0x8   :  { %49 = vperm.xlu0 %465, %v39_v7   ;;  %441 = vmatprep.mubr.msk.bf16.mxu1 %vm180_vm2, %v469_v18  ;;  %v471_v42 = vld [vmem:[%s606_s5] sm:$0xff]  }
   0x9   :  { %449 = vmatprep.mubr.msk.bf16.mxu0 %vm180_vm2, %v471_v42 }
   0xa   :  { %157 = vperm.xlu1 %466, %v147_v10  }
   0xc   :  { %152 = vperm.xlu0 %465, %v146_v9  }
   0xe   :  { %167 = vperm.xlu1 %466, %v149_v12  }
  0x10   :  { %162 = vperm.xlu0 %465, %v148_v11  }
  0x12   :  { %261 = vperm.xlu1 %466, %v251_v14  }
  0x14   :  { %256 = vperm.xlu0 %465, %v250_v13  }
  0x16   :  { %271 = vperm.xlu1 %466, %v253_v16  }
  0x18   :  { %266 = vperm.xlu0 %465, %v252_v15  }
  0x1c   :  { %353 = vperm.xlu0 %465, %v350_v17  }
  0x81   :  { %v55_v19 = vpop.permute.xlu1 %54 }
  0x83   :  { %v45_v20 = vpop.permute.xlu0 %44 }
  0x85   :  { %v60_v24 = vpop.permute.xlu1 %59 }
  0x87   :  { %v50_v27 = vpop.permute.xlu0 %49 }
  0x89   :  { %v158_v44 = vpop.permute.xlu1 %157 }
  0x8b   :  { %v153_v43 = vpop.permute.xlu0 %152 }
  0x8d   :  { %v168_v49 = vpop.permute.xlu1 %167 }
  0x8f   :  { %v163_v45 = vpop.permute.xlu0 %162 }
  0x91   :  { %v262_v4 = vpop.permute.xlu1 %261 }
  0x93   :  { %v257_v3 = vpop.permute.xlu0 %256 }
  0x95   :  { %v272_v9 = vpop.permute.xlu1 %271 }
  0x97   :  { %v267_v5 = vpop.permute.xlu0 %266 }
  0xd9   :  { %v435_v21 = vpop.f32.mrb[0].mxu0 }
  0xda   :  { %v126_v22 = vadd.f32 %v435_v21, %v55_v19  ;;  %v117_v23 = vpop.f32.mrb[1].mxu0 }
  0xdb   :  { %v118_v25 = vadd.f32 %v117_v23, %v45_v20  ;;  %v436_v26 = vpop.f32.mrb[2].mxu0 }
  0xdc   :  { %v134_v28 = vmul.f32 0.2, %v126_v22  ;;  %v129_v29 = vadd.f32 %v436_v26, %v60_v24  ;;  %v120_v30 = vpop.f32.mrb[3].mxu0  ;;  %v354_v26 = vpop.permute.xlu0 %353 }
  0xdd   :  { %v132_v31 = vmul.f32 0.2, %v118_v25  ;;  %v121_v32 = vadd.f32 %v120_v30, %v50_v27 }
  0xde   :  { %v135_v33 = vmul.f32 0.2, %v129_v29  ;;  %v138_v35 = vmax.f32 %v126_v22, %v134_v28 }
  0xdf   :  { %v133_v34 = vmul.f32 0.2, %v121_v32  ;;  %v136_v37 = vmax.f32 %v118_v25, %v132_v31  ;;  %v347_v25 = vld [vmem:[%s607_s7] sm:$0xf] }
  0xe0   :  { %v139_v36 = vmax.f32 %v129_v29, %v135_v33 }
  0xe1   :  { %v137_v38 = vmax.f32 %v121_v32, %v133_v34 }
  0xe2   :  { %v145_v39 = vpack.c.bf16 %v139_v36, %v138_v35 }
  0xe3   :  { %v144_v40 = vpack.c.bf16 %v137_v38, %v136_v37 }
  0xe5   :  { %437 = vmatprep.subr.bf16.mxu1 %v144_v40 }
  0xe6   :  { %438 = vmatpush3.bf16.msra.mxu1 %v144_v40 }
  0xe7   :  { %439 = vmatprep.subr.bf16.mxu1 %v145_v39 }
  0xea   :  { %440 = vmatpush3.bf16.msra.mxu1 %v145_v39 }
  0xeb   :  { %453 = vmatprep.subr.bf16.mxu1 %v474_v2 }
  0xed   :  { %442 = vmatmul.mubr.msk.bf16.vlgmr.msra.gmra.mrb[0].mxu1 %vm180_vm2, %v470_v41 }
  0xee   :  { %457 = vmatprep.mubr.msk.bf16.mxu1 %vm475_vm3, %v474_v2 }
 0x1c0   :  { %v443_v46 = vpop.f32.mrb[0].mxu1 }
 0x1c1   :  { %v230_v47 = vadd.f32 %v443_v46, %v163_v45  ;;  %v221_v48 = vpop.f32.mrb[1].mxu1 }
 0x1c2   :  { %v222_v50 = vadd.f32 %v221_v48, %v153_v43  ;;  %v444_v51 = vpop.f32.mrb[2].mxu1 }
 0x1c3   :  { %v238_v52 = vmul.f32 0.2, %v230_v47  ;;  %v233_v53 = vadd.f32 %v444_v51, %v168_v49  ;;  %v224_v54 = vpop.f32.mrb[3].mxu1 }
 0x1c4   :  { %v236_v55 = vmul.f32 0.2, %v222_v50  ;;  %v225_v56 = vadd.f32 %v224_v54, %v158_v44 }
 0x1c5   :  { %v239_v57 = vmul.f32 0.2, %v233_v53  ;;  %v242_v59 = vmax.f32 %v230_v47, %v238_v52 }
 0x1c6   :  { %v237_v58 = vmul.f32 0.2, %v225_v56  ;;  %v240_v61 = vmax.f32 %v222_v50, %v236_v55 }
 0x1c7   :  { %v243_v60 = vmax.f32 %v233_v53, %v239_v57 }
 0x1c8   :  { %v241_v62 = vmax.f32 %v225_v56, %v237_v58 }
 0x1c9   :  { %v249_v63 = vpack.c.bf16 %v243_v60, %v242_v59 }
 0x1ca   :  { %v248_v0 = vpack.c.bf16 %v241_v62, %v240_v61 }
 0x1cc   :  { %445 = vmatprep.subr.bf16.mxu0 %v248_v0 }
 0x1cd   :  { %446 = vmatpush3.bf16.msra.mxu0 %v248_v0 }
 0x1ce   :  { %447 = vmatprep.subr.bf16.mxu0 %v249_v63 }
 0x1d1   :  { %448 = vmatpush3.bf16.msra.mxu0 %v249_v63 }
 0x1d4   :  { %450 = vmatmul.mubr.msk.bf16.vlgmr.msra.gmra.mrb[4].mxu0 %vm180_vm2, %v472_v1 }
 0x2a7   :  { %v451_v6 = vpop.f32.mrb[4].mxu0 }
 0x2a8   :  { %v333_v7 = vadd.f32 %v451_v6, %v267_v5  ;;  %v324_v8 = vpop.f32.mrb[5].mxu0 }
 0x2a9   :  { %v325_v10 = vadd.f32 %v324_v8, %v257_v3  ;;  %v452_v11 = vpop.f32.mrb[6].mxu0 }
 0x2aa   :  { %v341_v12 = vmul.f32 0.2, %v333_v7  ;;  %v336_v13 = vadd.f32 %v452_v11, %v272_v9  ;;  %v327_v14 = vpop.f32.mrb[7].mxu0 }
 0x2ab   :  { %v339_v15 = vmul.f32 0.2, %v325_v10  ;;  %v328_v16 = vadd.f32 %v327_v14, %v262_v4 }
 0x2ac   :  { %v342_v17 = vmul.f32 0.2, %v336_v13  ;;  %v345_v19 = vmax.f32 %v333_v7, %v341_v12 }
 0x2ad   :  { %v340_v18 = vmul.f32 0.2, %v328_v16  ;;  %v343_v21 = vmax.f32 %v325_v10, %v339_v15 }
 0x2ae   :  { %v346_v20 = vmax.f32 %v336_v13, %v342_v17 }
 0x2af   :  { %v344_v22 = vmax.f32 %v328_v16, %v340_v18 }
 0x2b0   :  { %v349_v23 = vpack.c.bf16 %v346_v20, %v345_v19 }
 0x2b1   :  { %v348_v24 = vpack.c.bf16 %v344_v22, %v343_v21 }
 0x2b3   :  { %454 = vmatpush3.bf16.msra.mxu1 %v348_v24 }
 0x2b4   :  { %455 = vmatprep.subr.bf16.mxu1 %v474_v2 }
 0x2b7   :  { %456 = vmatpush3.bf16.msra.mxu1 %v349_v23 }
 0x2ba   :  { %458 = vmatmul.mubr.msk.bf16.vlgmr.msra.gmra.mrb[4].mxu1 %vm180_vm2, %v347_v25 }
 0x38d   :  { %v393_v27 = vpop.f32.mrb[4].mxu1 }
 0x38e   :  { %v394_v28 = vadd.f32 %v393_v27, %v354_v26  ;;  %v459_v29 = vpop.f32.mrb[5].mxu1 }
 0x38f   :  { %v396_v30 = vpop.f32.mrb[6].mxu1 }
 0x390   :  { %399 = vst [vmem:[%s608_s9] sm:$0xff] %v394_v28  ;;  %v460_v31 = vpop.f32.mrb[7].mxu1 }

</bundles_post_ra>
